<compile_context>
chip_gen: v7x
topology: tpu7x:2x2x1
jax: 0.10.0
libtpu: 0.0.40
codegen_flags: <defaults>
</compile_context>

<pallas_src>
import math
import numpy as np
import jax
import jax.numpy as jnp
from jax.experimental import pallas as pl
from jax.experimental.pallas import tpu as pltpu


# ----------------------------- kernels ------------------------------------ #

def _matmul_bias_kernel(x_ref, w_ref, b_ref, o_ref, acc_ref):
    # x_ref: (tb, tk), w_ref: (tk, tn), b_ref: (1, tn), o_ref/acc_ref: (tb, tn)
    k = pl.program_id(2)

    @pl.when(k == 0)
    def _():
        acc_ref[...] = jnp.zeros_like(acc_ref)

    acc_ref[...] += jnp.dot(
        x_ref[...], w_ref[...], preferred_element_type=jnp.float32
    )

    @pl.when(k == pl.num_programs(2) - 1)
    def _():
        o_ref[...] = (acc_ref[...] + b_ref[...].astype(jnp.float32)).astype(o_ref.dtype)


def _matmul_bias_single_kernel(x_ref, w_ref, b_ref, o_ref):
    # Single reduction step: no accumulator scratch, write the tile directly.
    o_ref[...] = (
        jnp.dot(x_ref[...], w_ref[...], preferred_element_type=jnp.float32)
        + b_ref[...].astype(jnp.float32)
    ).astype(o_ref.dtype)


# ----------------------------- tiling helpers ------------------------------ #

def _pick_tile(dim, target, align):
    """Largest `align`-multiple divisor of `dim` that is <= target.

    Falls back to the full dimension (always a legal block) only when no
    aligned divisor exists."""
    if dim <= target:
        return dim
    t = (target // align) * align
    while t >= align:
        if dim % t == 0:
            return t
        t -= align
    return dim


# ----------------------------- wrapper ------------------------------------- #

def linear_adapter_forward(x_cat, w_folded, b_sum, *, tb=None, tn=None, tk=None):
    """x_cat: (B, K');  w_folded: (K', N);  b_sum: (1, N)  ->  (B, N)."""
    B, Kp = x_cat.shape
    Kp2, N = w_folded.shape
    assert Kp2 == Kp and b_sum.shape == (1, N)

    if tb is None:
        tb = _pick_tile(B, 512, 8)      # sublane-aligned batch tile
    if tn is None:
        tn = _pick_tile(N, 512, 128)    # lane-dense output tile
    if tk is None:
        tk = _pick_tile(Kp, 1024, 128)  # contraction tile

    # Megacore (v7x has 2 TCs): make sure the parallel grid has >= 2 tiles.
    if (B // tb) * (N // tn) < 2:
        if tn % 256 == 0:
            tn //= 2
        elif tb % 16 == 0:
            tb //= 2

    gb, gn, gk = B // tb, N // tn, Kp // tk

    itemsize = jnp.dtype(x_cat.dtype).itemsize
    # Live VMEM: double-buffered x & w tiles + double-buffered output tile
    # + f32 accumulator + bias sliver.
    vmem_est = (2 * (tb * tk + tk * tn) * itemsize
                + 2 * tb * tn * itemsize
                + tb * tn * 4
                + 2 * tn * itemsize)
    vmem_limit = int(min(100 * 2**20, max(32 * 2**20, 2 * vmem_est)))

    # Real traffic model: W is re-read gb times, x is re-read gn times.
    cost = pl.CostEstimate(
        flops=2 * B * Kp * N,
        transcendentals=0,
        bytes_accessed=(gn * B * Kp + gb * Kp * N + N + B * N) * itemsize,
    )

    x_spec_3d = pl.BlockSpec((tb, tk), lambda i, j, k: (i, k))
    w_spec_3d = pl.BlockSpec((tk, tn), lambda i, j, k: (k, j))
    b_spec_3d = pl.BlockSpec((1, tn), lambda i, j, k: (0, j))
    o_spec_3d = pl.BlockSpec((tb, tn), lambda i, j, k: (i, j))

    if gk == 1:
        # Single reduction step: drop the K grid axis and the accumulator.
        grid_spec = pltpu.PrefetchScalarGridSpec(
            num_scalar_prefetch=0,
            grid=(gb, gn),
            in_specs=[
                pl.BlockSpec((tb, Kp), lambda i, j: (i, 0)),
                pl.BlockSpec((Kp, tn), lambda i, j: (0, j)),
                pl.BlockSpec((1, tn), lambda i, j: (0, j)),
            ],
            out_specs=pl.BlockSpec((tb, tn), lambda i, j: (i, j)),
        )
        kernel = _matmul_bias_single_kernel
        dim_sem = ("parallel", "parallel")
    else:
        grid_spec = pltpu.PrefetchScalarGridSpec(
            num_scalar_prefetch=0,
            grid=(gb, gn, gk),
            in_specs=[x_spec_3d, w_spec_3d, b_spec_3d],
            out_specs=o_spec_3d,
            scratch_shapes=[pltpu.VMEM((tb, tn), jnp.float32)],
        )
        kernel = _matmul_bias_kernel
        dim_sem = ("parallel", "parallel", "arbitrary")

    return pl.pallas_call(
        kernel,
        out_shape=jax.ShapeDtypeStruct((B, N), x_cat.dtype),
        grid_spec=grid_spec,
        compiler_params=pltpu.CompilerParams(
            dimension_semantics=dim_sem,
            vmem_limit_bytes=vmem_limit,
        ),
        cost_estimate=cost,
    )(x_cat, w_folded, b_sum)


# ----------------------------- module -------------------------------------- #

class LinearAdapter:
    """JAX/Pallas port of the PyTorch LinearAdapter (Progressive Neural Networks)."""

    def __init__(self, in_features, out_features_per_column, num_prev_modules,
                 *, key=None, dtype=jnp.float32):
        self.in_features = in_features
        self.out_features_per_column = out_features_per_column
        self.num_prev_modules = num_prev_modules
        if key is None:
            key = jax.random.PRNGKey(0)
        kw, kb = jax.random.split(key)
        bound = 1.0 / math.sqrt(in_features)  # nn.Linear default init bound
        # Torch-layout per-module parameters (kept for reference/inspection).
        self.weight = jax.random.uniform(
            kw, (num_prev_modules, out_features_per_column, in_features),
            dtype=dtype, minval=-bound, maxval=bound)
        self.bias = jax.random.uniform(
            kb, (num_prev_modules, out_features_per_column),
            dtype=dtype, minval=-bound, maxval=bound)
        # One-time fold: (M, N, K) -> (M, K, N) -> (M*K, N), and bias pre-sum.
        # TODO(synk): optionally cast weights/inputs to bf16 for the MXU fast path
        # when the adapter's numerics tolerate it (kept f32 here for exactness).
        self.weight_folded = jnp.transpose(self.weight, (0, 2, 1)).reshape(
            num_prev_modules * in_features, out_features_per_column)
        self.bias_sum = jnp.sum(self.bias, axis=0, keepdims=True)  # (1, N)

    def __call__(self, x):
        # x: list/tuple of (B, in_features) arrays, or a stacked (M, B, in_features) array.
        if isinstance(x, (list, tuple)):
            assert len(x) == self.num_prev_modules
            x_cat = jnp.concatenate(x, axis=-1)                     # (B, M*K)
        else:
            assert x.shape[0] == self.num_prev_modules
            x_cat = jnp.concatenate([x[m] for m in range(self.num_prev_modules)],
                                    axis=-1)
        return linear_adapter_forward(x_cat, self.weight_folded, self.bias_sum)


# ----------------------------- demo / check -------------------------------- #

if __name__ == "__main__":
    key = jax.random.PRNGKey(0)
    M, B, K, N = 3, 8, 32, 128  # num_prev_modules, batch, in_features, out_features
    kx, kp = jax.random.split(key)
    x_stack = jax.random.normal(kx, (M, B, K), dtype=jnp.float32)

    adapter = LinearAdapter(K, N, M, key=kp)
    out = adapter([x_stack[i] for i in range(M)])
    out = jax.block_until_ready(out)

    # Pure-JAX reference: sum_m x[m] @ W[m].T + b[m]
    ref = sum(x_stack[m] @ adapter.weight[m].T + adapter.bias[m] for m in range(M))
    assert out.shape == (B, N), (out.shape, (B, N))
    np.testing.assert_allclose(np.asarray(out), np.asarray(ref), rtol=1e-5, atol=1e-5)

    print("KERNEL_OK")
</pallas_src>

<mosaic_0001>
module attributes {stable_mosaic.version = 11 : i64} {
  func.func @_matmul_bias_single_kernel(%arg0: i32, %arg1: i32, %arg2: memref<8x96xf32, #tpu.memory_space<vmem>>, %arg3: memref<96x128xf32, #tpu.memory_space<vmem>>, %arg4: memref<1x128xf32, #tpu.memory_space<vmem>>, %arg5: memref<8x128xf32, #tpu.memory_space<vmem>>) attributes {dimension_semantics = [#tpu.dimension_semantics<parallel>, #tpu.dimension_semantics<parallel>], iteration_bounds = array<i64: 1, 1>, scalar_prefetch = 0 : i64, scratch_operands = 0 : i64, tpu.core_type = #tpu.core_type<tc>, window_params = [{transform_indices = @transform_0, window_bounds = array<i64: 8, 96>}, {transform_indices = @transform_1, window_bounds = array<i64: 96, 128>}, {transform_indices = @transform_2, window_bounds = array<i64: 1, 128>}, {transform_indices = @transform_3, window_bounds = array<i64: 8, 128>}]} {
    %c0 = arith.constant 0 : index
    %c0_0 = arith.constant 0 : index
    %0 = vector.load %arg2[%c0, %c0_0] : memref<8x96xf32, #tpu.memory_space<vmem>>, vector<8x96xf32>
    %c0_1 = arith.constant 0 : index
    %c0_2 = arith.constant 0 : index
    %1 = vector.load %arg3[%c0_1, %c0_2] : memref<96x128xf32, #tpu.memory_space<vmem>>, vector<96x128xf32>
    %cst = arith.constant dense<0.000000e+00> : vector<8x128xf32>
    %2 = tpu.matmul %0, %1, %cst {dimension_numbers = #tpu.dot_dimension_numbers<[1], [0], [0], [1], [0, 0, 1, 1], [], []>} : vector<8x96xf32>, vector<96x128xf32>, vector<8x128xf32> -> vector<8x128xf32>
    %c0_3 = arith.constant 0 : index
    %c0_4 = arith.constant 0 : index
    %3 = vector.load %arg4[%c0_3, %c0_4] : memref<1x128xf32, #tpu.memory_space<vmem>>, vector<1x128xf32>
    %4 = vector.broadcast %3 : vector<1x128xf32> to vector<8x128xf32>
    %5 = arith.addf %2, %4 : vector<8x128xf32>
    %c0_5 = arith.constant 0 : index
    %c0_6 = arith.constant 0 : index
    %6 = vector.load %arg5[%c0_5, %c0_6] : memref<8x128xf32, #tpu.memory_space<vmem>>, vector<8x128xf32>
    tpu.vector_store %arg5[%c0_5, %c0_6], %5 {strides = array<i32>} : memref<8x128xf32, #tpu.memory_space<vmem>>, vector<8x128xf32>,
    return
  }
  func.func @transform_0(%arg0: i32, %arg1: i32) -> (i32, i32) {
    %c0_i32 = arith.constant 0 : i32
    %c0_i32_0 = arith.constant 0 : i32
    return %arg0, %c0_i32 : i32, i32
  }
  func.func @transform_1(%arg0: i32, %arg1: i32) -> (i32, i32) {
    %c0_i32 = arith.constant 0 : i32
    %c0_i32_0 = arith.constant 0 : i32
    return %c0_i32, %arg1 : i32, i32
  }
  func.func @transform_2(%arg0: i32, %arg1: i32) -> (i32, i32) {
    %c0_i32 = arith.constant 0 : i32
    %c0_i32_0 = arith.constant 0 : i32
    return %c0_i32, %arg1 : i32, i32
  }
  func.func @transform_3(%arg0: i32, %arg1: i32) -> (i32, i32) {
    %c0_i32 = arith.constant 0 : i32
    return %arg0, %arg1 : i32, i32
  }
}

</mosaic_0001>

<bundles_post_ra>
// kernel: tpu_custom_call.1
= control target key start
LH: loop header
LB: loop body
LE: loop exit
PB: predicated region body
PF: predicated region fallthrough
CT: control target
= control target key end

     0   :  { %8 = vsyncpa [#allocation3], 0  ;;  %s366_s0 = inlined_call_operand.hbm [shape: f32[8,96], index: 0, kind: input, shape index: {}]   ;;  %s367_s1 = inlined_call_operand.hbm [shape: f32[96,128], index: 1, kind: input, shape index: {}]   ;;  %s368_s2 = inlined_call_operand.vmem [shape: f32[1,128], index: 2, kind: input, shape index: {}]   ;;  %s369_s3 = inlined_call_operand.hbm [shape: f32[8,128], index: 3, kind: output, shape index: {}]  }
   0x1   :  { %9 = vsyncpa [#allocation6], 0 }
   0x2   :  { %10 = vsyncpa [#allocation4], 0  ;;  %s292_s12 = smov [#allocation2]   ;;  %s293_s14 = smov [#allocation5]  }
   0x3   :  { %s17_s13 = sshll.u32 %s292_s12, 4  ;;  %s26_s15 = sshll.u32 %s293_s14, 4  ;;  %s18_s13 = int_to_ptr.vmem [resolvable:$true] %s17_s13  ;;  %s320_s15 = int_to_ptr.vmem [resolvable:$true] %s26_s15 }
   0x4   :  { %s220_s18 = scalar_lea.hbm %s366_s0, 128 }
   0x5   :  { %p221_p0 = scmp.ne.s32.totalorder %s366_s0, %s220_s18  ;;  %p224_p1 = scmp.lt.u32.totalorder %s220_s18, %s366_s0 }
   0x7   :  { %p226_p2 = pnand %p224_p1, %p221_p0 }
   0x9   :  { %229 = shalt.err (!%p226_p2)
}
   0xa   :  { %s230_s23 = scalar_lea.vmem %s18_s13, 128  ;;  %p235_p4 = scmp.lt.s32.totalorder %s18_s13, %s18_s13 }
   0xb   :  { %p231_p3 = scmp.ne.s32.totalorder %s18_s13, %s230_s23  ;;  %p236_p5 = scmp.lt.s32.totalorder %s230_s23, %s230_s23 }
   0xd   :  { %p237_p6 = por %p236_p5, %p235_p4 }
   0xf   :  { %p238_p7 = pnand %p237_p6, %p231_p3 }
  0x11   :  { %241 = shalt.err (!%p238_p7)
}
  0x12   :  { %20 = dma.hbm_to_vmem [thread:$0]  %s366_s0, 128, %s18_s13, [#allocation3]  }
  0x13   :  { %s242_s28 = scalar_lea.hbm %s367_s1, 1536 }
  0x14   :  { %p243_p8 = scmp.ne.s32.totalorder %s367_s1, %s242_s28  ;;  %p246_p9 = scmp.lt.u32.totalorder %s242_s28, %s367_s1 }
  0x16   :  { %p248_p10 = pnand %p246_p9, %p243_p8 }
  0x18   :  { %251 = shalt.err (!%p248_p10)
}
  0x19   :  { %s252_s6 = scalar_lea.vmem %s320_s15, 1536  ;;  %p257_p12 = scmp.lt.s32.totalorder %s320_s15, %s320_s15 }
  0x1a   :  { %p253_p11 = scmp.ne.s32.totalorder %s320_s15, %s252_s6  ;;  %p258_p13 = scmp.lt.s32.totalorder %s252_s6, %s252_s6 }
  0x1c   :  { %p259_p0 = por %p258_p13, %p257_p12 }
  0x1e   :  { %p260_p1 = pnand %p259_p0, %p253_p11 }
  0x20   :  { %263 = shalt.err (!%p260_p1)
}
  0x21   :  { %s294_s0 = smov 128   ;;  %s295_s7 = smov 8  }
  0x22   :  { %32 = dma.hbm_to_vmem [thread:$0]  %s367_s1, 1536, %s320_s15, [#allocation6], %s294_s0, %s294_s0, %s295_s7  }
  0x23   :  { %286 = dma.done.wait [#allocation3], 128  }
  0x24   :  { %287 = vsyncadd [#allocation3], 4294967168 }
  0x25   :  { %288 = dma.done.wait [#allocation6], 1536  }
  0x26   :  { %289 = vsyncadd [#allocation6], 4294965760  ;;  %v296_v0 = vmov 0.0|0.0   ;;  %vm297_vm0 = vmmov 0   ;;  %v298_v1 = vmov 0.0   ;;  %v42_v2 = vld [vmem:[#allocation5] sm:$0xff] }
  0x27   :  { %194 = vmatprep.subr.bf16.mxu0 %v296_v0  ;;  %191 = vmatprep.mubr.msk.f32.mxu0 %vm297_vm0, %v298_v1  ;;  %v43_v3 = vld [vmem:[#allocation5 + $0x8] sm:$0xff]  ;;  %v44_v4 = vld [vmem:[#allocation5 + $0x10] sm:$0xff]  ;;  %v45_v6 = vld [vmem:[#allocation5 + $0x18] sm:$0xff]  ;;  %vm61_vm1 = vcmask 785408   ;;  %s299_s11 = smov [#allocation7]  }
  0x28   :  { %v195_v5 = vpack.c.bf16 %v43_v3, %v42_v2  ;;  %v198_v7 = vpack.c.bf16 %v45_v6, %v44_v4  ;;  %v46_v8 = vld [vmem:[#allocation5 + $0x20] sm:$0xff]  ;;  %v47_v9 = vld [vmem:[#allocation5 + $0x28] sm:$0xff]  ;;  %v48_v11 = vld [vmem:[#allocation5 + $0x30] sm:$0xff]  ;;  %s142_s12 = sshll.u32 %s299_s11, 4  ;;  %s143_s12 = int_to_ptr.vmem [resolvable:$true] %s142_s12 }
  0x29   :  { %v201_v10 = vpack.c.bf16 %v47_v9, %v46_v8  ;;  %v49_v12 = vld [vmem:[#allocation5 + $0x38] sm:$0xff]  ;;  %v50_v14 = vld [vmem:[#allocation5 + $0x40] sm:$0xff]  ;;  %v51_v15 = vld [vmem:[#allocation5 + $0x48] sm:$0xff]  ;;  %s264_s13 = scalar_lea.vmem %s143_s12, 128  ;;  %p269_p3 = scmp.lt.s32.totalorder %s143_s12, %s143_s12 }
  0x2a   :  { %196 = vmatpush3.bf16.msra.mxu0 %v195_v5  ;;  %v204_v13 = vpack.c.bf16 %v49_v12, %v48_v11  ;;  %v207_v16 = vpack.c.bf16 %v51_v15, %v50_v14  ;;  %v52_v17 = vld [vmem:[#allocation5 + $0x50] sm:$0xff]  ;;  %v53_v18 = vld [vmem:[#allocation5 + $0x58] sm:$0xff]  ;;  %p265_p2 = scmp.ne.s32.totalorder %s143_s12, %s264_s13  ;;  %p270_p4 = scmp.lt.s32.totalorder %s264_s13, %s264_s13 }
  0x2b   :  { %197 = vmatprep.subr.bf16.mxu0 %v296_v0  ;;  %v210_v19 = vpack.c.bf16 %v53_v18, %v52_v17  ;;  %v41_v20 = vld [vmem:[#allocation2] sm:$0xff] }
  0x2c   :  { %v152_v21 = vld [vmem:[%s368_s2] ss:$0 sm:$0xff]  ;;  %p271_p5 = por %p270_p4, %p269_p3 }
  0x2e   :  { %199 = vmatpush3.bf16.msra.mxu0 %v198_v7  ;;  %p272_p6 = pnand %p271_p5, %p265_p2 }
  0x2f   :  { %200 = vmatprep.subr.bf16.mxu0 %v296_v0 }
  0x32   :  { %202 = vmatpush3.bf16.msra.mxu0 %v201_v10 }
  0x33   :  { %203 = vmatprep.subr.bf16.mxu0 %v296_v0 }
  0x36   :  { %205 = vmatpush3.bf16.msra.mxu0 %v204_v13 }
  0x37   :  { %206 = vmatprep.subr.bf16.mxu0 %v296_v0 }
  0x3a   :  { %208 = vmatpush3.bf16.msra.mxu0 %v207_v16 }
  0x3b   :  { %209 = vmatprep.subr.bf16.mxu0 %v296_v0 }
  0x3e   :  { %211 = vmatpush3.bf16.msra.mxu0 %v210_v19 }
  0x41   :  { %192 = vmatmul.mubr.msk.f32.vlgmr.msra.gmra.mrb[0].mxu0 %vm61_vm1, %v41_v20 }
 0x114   :  { %v131_v22 = vpop.f32.mrb[0].mxu0 }
 0x115   :  { %v132_v23 = vadd.f32 %v152_v21, %v131_v22  ;;  %v193_v24 = vpop.f32.mrb[1].mxu0 }
 0x117   :  { %135 = vst [vmem:[#allocation7] sm:$0xff] %v132_v23 }
 0x118   :  { %275 = shalt.err (!%p272_p6)
}
 0x119   :  { %s276_s16 = scalar_lea.hbm %s369_s3, 128 }
 0x11a   :  { %p277_p7 = scmp.ne.s32.totalorder %s369_s3, %s276_s16  ;;  %p280_p8 = scmp.lt.u32.totalorder %s276_s16, %s369_s3 }
 0x11c   :  { %p282_p9 = pnand %p280_p8, %p277_p7 }
 0x11e   :  { %285 = shalt.err (!%p282_p9)
}
 0x11f   :  { %145 = dma.vmem_to_hbm [thread:$0]  %s143_s12, 128, %s369_s3, [#allocation4]  }
 0x120   :  { %290 = dma.done.wait [#allocation4], 128  }
 0x121   :  { %291 = vsyncadd [#allocation4], 4294967168 }
 0x122   :  { %149 = vsyncpa [#allocation3], 1 }
 0x123   :  { %150 = vsyncpa [#allocation6], 1 }
 0x124   :  { %151 = vsyncpa [#allocation4], 1 }

</bundles_post_ra>
